<compile_context>
chip_gen: v6e
topology: v6e:2x2x1
jax: 0.10.0
libtpu: 0.0.40
codegen_flags: <defaults>
</compile_context>

<pallas_src>
import functools

import jax
import jax.numpy as jnp
from jax.experimental import pallas as pl
from jax.experimental.pallas import tpu as pltpu


def _round_up(x, m):
    return (x + m - 1) // m * m


def _cdiv(a, b):
    return -(-a // b)


def _choose_tile(B, tile_b_max=1024):
    """Pick (tile_b, grid): fewest steps with tiles <= tile_b_max, split evenly."""
    steps = max(1, _cdiv(B, tile_b_max))
    # v7x has 2 TensorCores; the 'parallel' grid axis only splits work if there
    # are >= 2 steps. Force a split once the batch is big enough to be worth it.
    if steps < 2 and B >= 512:
        steps = 2
    tile_b = _round_up(_cdiv(B, steps), 16)     # 16-row aligned (bf16 sublane packing)
    if tile_b >= B:                              # single tile: match the array closely
        tile_b = B if B <= 8 else _round_up(B, 8)
    grid = _cdiv(B, tile_b)
    return tile_b, grid


def _make_kernel(h0, h1, n_act):
    """Build the dueling-actor kernel with static layer widths baked in."""
    two_h1 = 2 * h1
    n_out = 1 + n_act
    inv_a = 1.0 / n_act

    def kernel(obs_ref, w0_ref, w1_ref, wh0_ref, wh1_ref, bias_ref, out_ref):
        # obs arrives f32; cast to bf16 in-kernel (cheap VPU pack) so the wrapper
        # does not burn an extra HBM read+write pass over obs.
        x = obs_ref[...].astype(jnp.bfloat16)

        # Packed bias slab: one row per layer, lane offset 0, static widths.
        b0 = bias_ref[0:1, 0:h0]
        b1 = bias_ref[1:2, 0:h1]
        bh0 = bias_ref[2:3, 0:two_h1]
        bh1 = bias_ref[3:4, 0:n_out]

        # ---- base module (MLP, ReLU activations) ----
        h = jnp.dot(x, w0_ref[...], preferred_element_type=jnp.float32) + b0
        h = jnp.maximum(h, 0.0).astype(jnp.bfloat16)

        h = jnp.dot(h, w1_ref[...], preferred_element_type=jnp.float32) + b1
        h = jnp.maximum(h, 0.0).astype(jnp.bfloat16)

        # ---- fused value|advantage hidden layer: one lane-dense (h1, 2*h1) matmul ----
        hh = jnp.dot(h, wh0_ref[...], preferred_element_type=jnp.float32) + bh0
        hh = jnp.maximum(hh, 0.0).astype(jnp.bfloat16)

        # ---- fused block-diagonal output layer -> (tile_b, 1 + A) ----
        # col 0 = value, cols 1: = advantage (zero blocks contribute exactly 0).
        va = jnp.dot(hh, wh1_ref[...], preferred_element_type=jnp.float32) + bh1
        value = va[:, 0:1]
        adv = va[:, 1:]

        # ---- greedy action from adv (argmax is invariant to the per-row shift),
        # first-occurrence tie-break; XLU reductions overlap the combine below ----
        col = jax.lax.broadcasted_iota(jnp.int32, adv.shape, dimension=1)
        amax = jnp.max(adv, axis=-1, keepdims=True)
        idx = jnp.min(jnp.where(adv == amax, col, n_act), axis=-1, keepdims=True)

        # ---- dueling combination (sum * 1/A instead of mean) ----
        q = value + adv - jnp.sum(adv, axis=-1, keepdims=True) * inv_a

        # Single lane-contiguous f32 slab: cols [0, A) = q, col A = action.
        out_ref[...] = jnp.concatenate([q, idx.astype(jnp.float32)], axis=-1)

    return kernel


@functools.partial(jax.jit, static_argnames=("tile_b_max",))
def actor_forward(obs, fused_params, *, tile_b_max=1024):
    """Greedy (deterministic=True) forward of the dueling-DQN actor.

    obs: (B, ...) observation; flattened to (B, obs_dim) (kept f32 on HBM).
    fused_params: dict from fuse_params().
    Returns (actions (B,1) int32, q (B,A) float32).
    """
    B = obs.shape[0]
    obs_flat = obs.reshape(B, -1).astype(jnp.float32)
    obs_dim = obs_flat.shape[1]

    w0 = fused_params["w0"]
    w1 = fused_params["w1"]
    wh0 = fused_params["wh0"]
    wh1 = fused_params["wh1"]
    bias = fused_params["bias"]

    h0 = w0.shape[1]
    h1 = w1.shape[1]
    n_out = wh1.shape[1]
    n_act = n_out - 1

    tile_b, grid = _choose_tile(B, tile_b_max)
    kernel = _make_kernel(h0, h1, n_act)

    def resident(shape):
        # Whole-array block, same block index every grid step -> stays VMEM-resident.
        return pl.BlockSpec(shape, lambda i: (0, 0))

    flops = 2 * B * (obs_dim * h0 + h0 * h1 + h1 * 2 * h1 + 2 * h1 * n_out)
    bytes_accessed = (obs_flat.size * 4 + B * n_out * 4
                      + (w0.size + w1.size + wh0.size + wh1.size) * 2
                      + bias.size * 4)

    out = pl.pallas_call(
        kernel,
        out_shape=jax.ShapeDtypeStruct((B, n_out), jnp.float32),
        grid=(grid,),
        in_specs=[pl.BlockSpec((tile_b, obs_dim), lambda i: (i, 0)),
                  resident(w0.shape), resident(w1.shape),
                  resident(wh0.shape), resident(wh1.shape),
                  resident(bias.shape)],
        out_specs=pl.BlockSpec((tile_b, n_out), lambda i: (i, 0)),
        compiler_params=pltpu.CompilerParams(
            dimension_semantics=("parallel",)),
        cost_estimate=pl.CostEstimate(flops=flops, transcendentals=0,
                                      bytes_accessed=bytes_accessed),
    )(obs_flat, w0, w1, wh0, wh1, bias)

    q = out[:, :n_act]
    actions = out[:, n_act:].astype(jnp.int32)
    return actions, q


def init_params(key, obs_dim, hidden_size, n_actions):
    """Deterministic synthetic parameters matching the module shapes.

    hidden_size = [h0, h1]; value/advantage hidden layers use hidden_size[1].
    Weights are (in, out) so the forward computes y = x @ W + b.
    """
    h0, h1 = hidden_size
    hv = h1  # value head hidden width     (config['value']['layers'] = [hidden_size[1]])
    ha = h1  # advantage head hidden width
    keys = jax.random.split(key, 6)

    def lin(k, fan_in, fan_out):
        bound = 1.0 / jnp.sqrt(fan_in)
        kw, kb = jax.random.split(k)
        w = jax.random.uniform(kw, (fan_in, fan_out), jnp.float32, -bound, bound)
        b = jax.random.uniform(kb, (1, fan_out), jnp.float32, -bound, bound)
        return w, b

    w0, b0 = lin(keys[0], obs_dim, h0)
    w1, b1 = lin(keys[1], h0, h1)
    wv0, bv0 = lin(keys[2], h1, hv)
    wv1, bv1 = lin(keys[3], hv, 1)
    wa0, ba0 = lin(keys[4], h1, ha)
    wa1, ba1 = lin(keys[5], ha, n_actions)
    return dict(w0=w0, b0=b0, w1=w1, b1=b1,
                wv0=wv0, bv0=bv0, wv1=wv1, bv1=bv1,
                wa0=wa0, ba0=ba0, wa1=wa1, ba1=ba1)


def fuse_params(params, mxu_dtype=jnp.bfloat16):
    """One-time fusion of value/advantage heads + matmul-weight cast + bias pack.

    - wh0 = [wv0 | wa0]  -> (h1, 2*h1) lane-dense hidden layer
    - wh1 = block_diag(wv1, wa1) -> (2*h1, 1+A): col 0 is value, cols 1: are adv
    - bias: (4, maxw) f32 slab, one row per layer (b0, b1, [bv0|ba0], [bv1|ba1]).
    """
    h0 = params["w0"].shape[1]
    h1 = params["w1"].shape[1]
    n_act = params["wa1"].shape[1]
    n_out = 1 + n_act

    wh0 = jnp.concatenate([params["wv0"], params["wa0"]], axis=1)      # (h1, 2*h1)

    wh1 = jnp.zeros((2 * h1, n_out), jnp.float32)
    wh1 = wh1.at[:h1, 0:1].set(params["wv1"])
    wh1 = wh1.at[h1:, 1:].set(params["wa1"])

    maxw = _round_up(max(h0, h1, 2 * h1, n_out), 128)
    bias = jnp.zeros((4, maxw), jnp.float32)
    bias = bias.at[0, :h0].set(params["b0"][0])
    bias = bias.at[1, :h1].set(params["b1"][0])
    bias = bias.at[2, :h1].set(params["bv0"][0])
    bias = bias.at[2, h1:2 * h1].set(params["ba0"][0])
    bias = bias.at[3, 0].set(params["bv1"][0, 0])
    bias = bias.at[3, 1:n_out].set(params["ba1"][0])

    return dict(
        w0=params["w0"].astype(mxu_dtype),
        w1=params["w1"].astype(mxu_dtype),
        wh0=wh0.astype(mxu_dtype),
        wh1=wh1.astype(mxu_dtype),
        bias=bias,
    )


def _reference_forward(obs, params):
    """Pure-JAX reference of the same math with matching bf16 matmul operands."""
    B = obs.shape[0]
    x = obs.reshape(B, -1).astype(jnp.bfloat16)

    def dot(a, w):
        return jnp.dot(a, w.astype(jnp.bfloat16), preferred_element_type=jnp.float32)

    h = jnp.maximum(dot(x, params["w0"]) + params["b0"], 0.0).astype(jnp.bfloat16)
    h = jnp.maximum(dot(h, params["w1"]) + params["b1"], 0.0).astype(jnp.bfloat16)
    vh = jnp.maximum(dot(h, params["wv0"]) + params["bv0"], 0.0).astype(jnp.bfloat16)
    value = dot(vh, params["wv1"]) + params["bv1"]
    ah = jnp.maximum(dot(h, params["wa0"]) + params["ba0"], 0.0).astype(jnp.bfloat16)
    adv = dot(ah, params["wa1"]) + params["ba1"]
    q = value + adv - jnp.mean(adv, axis=-1, keepdims=True)
    actions = jnp.argmax(q, axis=-1, keepdims=True).astype(jnp.int32)
    return actions, q


if __name__ == "__main__":
    key = jax.random.PRNGKey(0)
    k_obs, k_params = jax.random.split(key)

    # Small highway-style observation: 8 envs, 5 vehicles x 5 kinematic features.
    B, V, F = 8, 5, 5
    obs = jax.random.normal(k_obs, (B, V, F), dtype=jnp.float32)

    hidden_size = [64, 64]   # args.hidden_size
    n_actions = 5            # highway DiscreteMetaAction space
    params = init_params(k_params, obs_dim=V * F, hidden_size=hidden_size,
                         n_actions=n_actions)
    fused = fuse_params(params)

    actions, q = actor_forward(obs, fused)
    jax.block_until_ready((actions, q))

    ref_actions, ref_q = _reference_forward(obs, params)

    assert actions.shape == (B, 1) and actions.dtype == jnp.int32
    assert q.shape == (B, n_actions) and q.dtype == jnp.float32
    assert bool(jnp.all((actions >= 0) & (actions < n_actions)))
    # bf16 matmul operands -> loosened tolerance vs the (bf16-matched) reference.
    assert jnp.allclose(q, ref_q, atol=1e-2, rtol=1e-2)
    # Greedy consistency on the kernel's own q (argmax computed from adv is
    # shift-invariant; allow only fp near-tie slack).
    picked = jnp.take_along_axis(q, actions, axis=-1)
    assert bool(jnp.all(picked >= jnp.max(q, axis=-1, keepdims=True) - 1e-5))
    # Against the reference actions, allow disagreement only on near-ties.
    ref_best = jnp.take_along_axis(ref_q, ref_actions, axis=-1)
    ker_pick = jnp.take_along_axis(ref_q, actions, axis=-1)
    assert bool(jnp.all((actions == ref_actions) | (jnp.abs(ref_best - ker_pick) < 1e-2)))

    print("KERNEL_OK")
</pallas_src>

<mosaic_0001>
module attributes {stable_mosaic.version = 11 : i64} {
  func.func @kernel(%arg0: i32, %arg1: memref<8x25xf32, #tpu.memory_space<vmem>>, %arg2: memref<25x64xbf16, #tpu.memory_space<vmem>>, %arg3: memref<64x64xbf16, #tpu.memory_space<vmem>>, %arg4: memref<64x128xbf16, #tpu.memory_space<vmem>>, %arg5: memref<128x6xbf16, #tpu.memory_space<vmem>>, %arg6: memref<4x128xf32, #tpu.memory_space<vmem>>, %arg7: memref<8x6xf32, #tpu.memory_space<vmem>>) attributes {dimension_semantics = [#tpu.dimension_semantics<parallel>], iteration_bounds = array<i64: 1>, scalar_prefetch = 0 : i64, scratch_operands = 0 : i64, tpu.core_type = #tpu.core_type<tc>, window_params = [{transform_indices = @transform_0, window_bounds = array<i64: 8, 25>}, {pipeline_mode = #tpu.pipeline_mode<synchronous>, transform_indices = @transform_1, window_bounds = array<i64: 25, 64>}, {pipeline_mode = #tpu.pipeline_mode<synchronous>, transform_indices = @transform_2, window_bounds = array<i64: 64, 64>}, {pipeline_mode = #tpu.pipeline_mode<synchronous>, transform_indices = @transform_3, window_bounds = array<i64: 64, 128>}, {pipeline_mode = #tpu.pipeline_mode<synchronous>, transform_indices = @transform_4, window_bounds = array<i64: 128, 6>}, {pipeline_mode = #tpu.pipeline_mode<synchronous>, transform_indices = @transform_5, window_bounds = array<i64: 4, 128>}, {transform_indices = @transform_6, window_bounds = array<i64: 8, 6>}]} {
    %c0 = arith.constant 0 : index
    %c0_0 = arith.constant 0 : index
    %0 = vector.load %arg1[%c0, %c0_0] : memref<8x25xf32, #tpu.memory_space<vmem>>, vector<8x25xf32>
    %1 = arith.truncf %0 : vector<8x25xf32> to vector<8x25xbf16>
    %c0_1 = arith.constant 0 : index
    %c0_2 = arith.constant 0 : index
    %2 = vector.load %arg6[%c0_1, %c0_2] : memref<4x128xf32, #tpu.memory_space<vmem>>, vector<1x64xf32>
    %c1 = arith.constant 1 : index
    %c0_3 = arith.constant 0 : index
    %3 = vector.load %arg6[%c1, %c0_3] : memref<4x128xf32, #tpu.memory_space<vmem>>, vector<1x64xf32>
    %c2 = arith.constant 2 : index
    %c0_4 = arith.constant 0 : index
    %4 = vector.load %arg6[%c2, %c0_4] : memref<4x128xf32, #tpu.memory_space<vmem>>, vector<1x128xf32>
    %c3 = arith.constant 3 : index
    %c0_5 = arith.constant 0 : index
    %5 = vector.load %arg6[%c3, %c0_5] : memref<4x128xf32, #tpu.memory_space<vmem>>, vector<1x6xf32>
    %c0_6 = arith.constant 0 : index
    %c0_7 = arith.constant 0 : index
    %6 = vector.load %arg2[%c0_6, %c0_7] : memref<25x64xbf16, #tpu.memory_space<vmem>>, vector<25x64xbf16>
    %cst = arith.constant dense<0.000000e+00> : vector<8x64xf32>
    %7 = tpu.matmul %1, %6, %cst {dimension_numbers = #tpu.dot_dimension_numbers<[1], [0], [0], [1], [0, 0, 1, 1], [], []>} : vector<8x25xbf16>, vector<25x64xbf16>, vector<8x64xf32> -> vector<8x64xf32>
    %8 = vector.broadcast %2 : vector<1x64xf32> to vector<8x64xf32>
    %9 = arith.addf %7, %8 : vector<8x64xf32>
    %cst_8 = arith.constant 0.000000e+00 : f32
    %10 = vector.broadcast %cst_8 : f32 to vector<8x64xf32>
    %11 = arith.maximumf %9, %10 : vector<8x64xf32>
    %12 = arith.truncf %11 : vector<8x64xf32> to vector<8x64xbf16>
    %c0_9 = arith.constant 0 : index
    %c0_10 = arith.constant 0 : index
    %13 = vector.load %arg3[%c0_9, %c0_10] : memref<64x64xbf16, #tpu.memory_space<vmem>>, vector<64x64xbf16>
    %cst_11 = arith.constant dense<0.000000e+00> : vector<8x64xf32>
    %14 = tpu.matmul %12, %13, %cst_11 {dimension_numbers = #tpu.dot_dimension_numbers<[1], [0], [0], [1], [0, 0, 1, 1], [], []>} : vector<8x64xbf16>, vector<64x64xbf16>, vector<8x64xf32> -> vector<8x64xf32>
    %15 = vector.broadcast %3 : vector<1x64xf32> to vector<8x64xf32>
    %16 = arith.addf %14, %15 : vector<8x64xf32>
    %cst_12 = arith.constant 0.000000e+00 : f32
    %17 = vector.broadcast %cst_12 : f32 to vector<8x64xf32>
    %18 = arith.maximumf %16, %17 : vector<8x64xf32>
    %19 = arith.truncf %18 : vector<8x64xf32> to vector<8x64xbf16>
    %c0_13 = arith.constant 0 : index
    %c0_14 = arith.constant 0 : index
    %20 = vector.load %arg4[%c0_13, %c0_14] : memref<64x128xbf16, #tpu.memory_space<vmem>>, vector<64x128xbf16>
    %cst_15 = arith.constant dense<0.000000e+00> : vector<8x128xf32>
    %21 = tpu.matmul %19, %20, %cst_15 {dimension_numbers = #tpu.dot_dimension_numbers<[1], [0], [0], [1], [0, 0, 1, 1], [], []>} : vector<8x64xbf16>, vector<64x128xbf16>, vector<8x128xf32> -> vector<8x128xf32>
    %22 = vector.broadcast %4 : vector<1x128xf32> to vector<8x128xf32>
    %23 = arith.addf %21, %22 : vector<8x128xf32>
    %cst_16 = arith.constant 0.000000e+00 : f32
    %24 = vector.broadcast %cst_16 : f32 to vector<8x128xf32>
    %25 = arith.maximumf %23, %24 : vector<8x128xf32>
    %26 = arith.truncf %25 : vector<8x128xf32> to vector<8x128xbf16>
    %c0_17 = arith.constant 0 : index
    %c0_18 = arith.constant 0 : index
    %27 = vector.load %arg5[%c0_17, %c0_18] : memref<128x6xbf16, #tpu.memory_space<vmem>>, vector<128x6xbf16>
    %cst_19 = arith.constant dense<0.000000e+00> : vector<8x6xf32>
    %28 = tpu.matmul %26, %27, %cst_19 {dimension_numbers = #tpu.dot_dimension_numbers<[1], [0], [0], [1], [0, 0, 1, 1], [], []>} : vector<8x128xbf16>, vector<128x6xbf16>, vector<8x6xf32> -> vector<8x6xf32>
    %29 = vector.broadcast %5 : vector<1x6xf32> to vector<8x6xf32>
    %30 = arith.addf %28, %29 : vector<8x6xf32>
    %31 = vector.extract_strided_slice %30 {offsets = [0, 0], sizes = [8, 1], strides = [1, 1]} : vector<8x6xf32> to vector<8x1xf32>
    %32 = vector.extract_strided_slice %30 {offsets = [0, 1], sizes = [8, 5], strides = [1, 1]} : vector<8x6xf32> to vector<8x5xf32>
    %33 = tpu.iota {dimensions = array<i32: 1>} : vector<8x5xi32>
    %cst_20 = arith.constant dense<0xFF800000> : vector<8xf32>
    %34 = vector.multi_reduction <maximumf>, %32, %cst_20 [1] : vector<8x5xf32> to vector<8xf32>
    %35 = vector.shape_cast %34 : vector<8xf32> to vector<8x1xf32>
    %36 = vector.broadcast %35 : vector<8x1xf32> to vector<8x5xf32>
    %37 = arith.cmpf oeq, %32, %36 : vector<8x5xf32>
    %c5_i32 = arith.constant 5 : i32
    %38 = vector.broadcast %c5_i32 : i32 to vector<8x5xi32>
    %39 = arith.select %37, %33, %38 : vector<8x5xi1>, vector<8x5xi32>
    %cst_21 = arith.constant dense<2147483647> : vector<8xi32>
    %40 = vector.multi_reduction <minsi>, %39, %cst_21 [1] : vector<8x5xi32> to vector<8xi32>
    %41 = vector.shape_cast %40 : vector<8xi32> to vector<8x1xi32>
    %42 = vector.broadcast %31 : vector<8x1xf32> to vector<8x5xf32>
    %43 = arith.addf %42, %32 : vector<8x5xf32>
    %cst_22 = arith.constant dense<0.000000e+00> : vector<8xf32>
    %44 = vector.multi_reduction <add>, %32, %cst_22 [1] : vector<8x5xf32> to vector<8xf32>
    %45 = vector.shape_cast %44 : vector<8xf32> to vector<8x1xf32>
    %cst_23 = arith.constant 2.000000e-01 : f32
    %46 = vector.broadcast %cst_23 : f32 to vector<8x1xf32>
    %47 = arith.mulf %45, %46 : vector<8x1xf32>
    %48 = vector.broadcast %47 : vector<8x1xf32> to vector<8x5xf32>
    %49 = arith.subf %43, %48 : vector<8x5xf32>
    %50 = arith.sitofp %41 : vector<8x1xi32> to vector<8x1xf32>
    %51 = tpu.concatenate %49, %50 in 1 : vector<8x5xf32>, vector<8x1xf32> -> vector<8x6xf32>
    %c0_24 = arith.constant 0 : index
    %c0_25 = arith.constant 0 : index
    %52 = vector.load %arg7[%c0_24, %c0_25] : memref<8x6xf32, #tpu.memory_space<vmem>>, vector<8x6xf32>
    tpu.vector_store %arg7[%c0_24, %c0_25], %51 {strides = array<i32>} : memref<8x6xf32, #tpu.memory_space<vmem>>, vector<8x6xf32>,
    return
  }
  func.func @transform_0(%arg0: i32) -> (i32, i32) {
    %c0_i32 = arith.constant 0 : i32
    %c0_i32_0 = arith.constant 0 : i32
    return %arg0, %c0_i32 : i32, i32
  }
  func.func @transform_1(%arg0: i32) -> (i32, i32) {
    %c0_i32 = arith.constant 0 : i32
    %c0_i32_0 = arith.constant 0 : i32
    %c0_i32_1 = arith.constant 0 : i32
    return %c0_i32, %c0_i32_0 : i32, i32
  }
  func.func @transform_2(%arg0: i32) -> (i32, i32) {
    %c0_i32 = arith.constant 0 : i32
    %c0_i32_0 = arith.constant 0 : i32
    %c0_i32_1 = arith.constant 0 : i32
    return %c0_i32, %c0_i32_0 : i32, i32
  }
  func.func @transform_3(%arg0: i32) -> (i32, i32) {
    %c0_i32 = arith.constant 0 : i32
    %c0_i32_0 = arith.constant 0 : i32
    %c0_i32_1 = arith.constant 0 : i32
    return %c0_i32, %c0_i32_0 : i32, i32
  }
  func.func @transform_4(%arg0: i32) -> (i32, i32) {
    %c0_i32 = arith.constant 0 : i32
    %c0_i32_0 = arith.constant 0 : i32
    %c0_i32_1 = arith.constant 0 : i32
    return %c0_i32, %c0_i32_0 : i32, i32
  }
  func.func @transform_5(%arg0: i32) -> (i32, i32) {
    %c0_i32 = arith.constant 0 : i32
    %c0_i32_0 = arith.constant 0 : i32
    %c0_i32_1 = arith.constant 0 : i32
    return %c0_i32, %c0_i32_0 : i32, i32
  }
  func.func @transform_6(%arg0: i32) -> (i32, i32) {
    %c0_i32 = arith.constant 0 : i32
    %c0_i32_0 = arith.constant 0 : i32
    return %arg0, %c0_i32 : i32, i32
  }
}

</mosaic_0001>

<bundles_post_ra>
// kernel: actor_forward.1
= control target key start
LH: loop header
LB: loop body
LE: loop exit
PB: predicated region body
PF: predicated region fallthrough
CT: control target
= control target key end

     0   :  { %vm53_vm0 = vcmask 1043456   ;;  %vm54_vm1 = vcmask 1044480   ;;  %v550_v0 = vmov 0.0   ;;  %v551_v2 = vmov 65535   ;;  %s697_s1 = inlined_call_operand.vmem [shape: bf16[25,64], index: 1, kind: input, shape index: {}]   ;;  %s698_s0 = inlined_call_operand.vmem [shape: f32[8,25], index: 0, kind: input, shape index: {}]   ;;  %s699_s2 = inlined_call_operand.vmem [shape: bf16[64,64], index: 2, kind: input, shape index: {}]   ;;  %s700_s3 = inlined_call_operand.vmem [shape: bf16[64,128], index: 3, kind: input, shape index: {}]   ;;  %s701_s5 = inlined_call_operand.vmem [shape: f32[4,128], index: 5, kind: input, shape index: {}]   ;;  %s702_s4 = inlined_call_operand.vmem [shape: bf16[128,6], index: 4, kind: input, shape index: {}]   ;;  %s703_s6 = inlined_call_operand.vmem [shape: f32[8,6], index: 6, kind: output, shape index: {}]  }
   0x1   :  { %472 = vmatprep.subr.bf16.mxu0 %v550_v0  ;;  %v532_v1 = vld [vmem:[%s697_s1 + $0x8] sm:$0x1f]   ;;  %504 = vmatprep.subr.bf16.mxu1 %v550_v0  ;;  %v55_v3 = vsel %vm53_vm0, 4294967295, %v551_v2  ;;  %vm552_vm2 = vmmov 0   ;;  %v533_v6 = vld [vmem:[%s697_s1] sm:$0xff]   ;;  %vm49_vm3 = vcmask 203776   ;;  %v373_v56 = vlaneseq }
   0x2   :  { %v56_v4 = vsel %vm54_vm1, %v55_v3, 0  ;;  %476 = vmatprep.mubr.msk.bf16.mxu0 %vm552_vm2, %v550_v0  ;;  %520 = vmatprep.mubr.msk.bf16.mxu1 %vm552_vm2, %v550_v0  ;;  %v24_v7 = vld [vmem:[%s698_s0] sm:$0xff]  ;;  %v534_v9 = vld [vmem:[%s699_s2 + $0x18] sm:$0xff]   ;;  %v535_v10 = vld [vmem:[%s699_s2 + $0x10] sm:$0xff]   ;;  %vm138_vm4 = vcmask 523264   ;;  %vm375_vm5 = vcmask 48136  }
   0x3   :  { %v58_v5 = vand.u32 %v532_v1, %v56_v4  ;;  %v25_v8 = vpack.c.bf16 %v24_v7, %v24_v7  ;;  %v536_v11 = vld [vmem:[%s699_s2 + $0x8] sm:$0xff]   ;;  %v537_v12 = vld [vmem:[%s699_s2] sm:$0xff]   ;;  %v538_v19 = vld [vmem:[%s700_s3 + $0x18] sm:$0xff]   ;;  %v374_v57 = vand.u32 127, %v373_v56  ;;  %v554_v58 = vmov 0   ;;  %s555_s2 = smov 1  }
   0x4   :  { %v425_v13 = vld [vmem:[%s701_s5] ss:$0 sm:$0xff]  ;;  %v539_v22 = vld [vmem:[%s700_s3 + $0x10] sm:$0xff]   ;;  %v540_v23 = vld [vmem:[%s700_s3 + $0x8] sm:$0xff]   ;;  %530 = vset.pattern.permute.xlu1 %v554_v58  ;;  %531 = vset.pattern.permute.xlu0 %v554_v58  ;;  %vm407_vm6 = vcmask 39936   ;;  %vm419_vm9 = vcmask 48128  }
   0x5   :  { %473 = vmatpush3.bf16.msra.mxu0 %v58_v5  ;;  %v541_v24 = vld [vmem:[%s700_s3] sm:$0xff]   ;;  %v542_v25 = vld [vmem:[%s702_s4 + $0x38] sm:$0xff]   ;;  %v543_v26 = vld [vmem:[%s702_s4 + $0x30] sm:$0xff]  }
   0x6   :  { %474 = vmatprep.subr.bf16.mxu0 %v550_v0  ;;  %505 = vmatpush3.bf16.msra.mxu1 %v542_v25  ;;  %v544_v27 = vld [vmem:[%s702_s4 + $0x28] sm:$0xff]   ;;  %v545_v28 = vld [vmem:[%s702_s4 + $0x20] sm:$0xff]   ;;  %v546_v29 = vld [vmem:[%s702_s4 + $0x18] sm:$0xff]  }
   0x7   :  { %506 = vmatprep.subr.bf16.mxu1 %v550_v0  ;;  %v547_v30 = vld [vmem:[%s702_s4 + $0x10] sm:$0xff]   ;;  %v429_v31 = vld [vmem:[%s701_s5 + $0x1] ss:$0 sm:$0xff]  ;;  %v548_v39 = vld [vmem:[%s702_s4 + $0x8] sm:$0xff]  }
   0x8   :  { %v549_v40 = vld [vmem:[%s702_s4] sm:$0xff]   ;;  %s553_s4 = smov 127  }
   0x9   :  { %475 = vmatpush3.bf16.msra.mxu0 %v533_v6  ;;  %v435_v41 = vld [vmem:[%s701_s5 + $0x2] ss:$0 sm:$0xff]  ;;  %v441_v49 = vld [vmem:[%s701_s5 + $0x3] ss:$0 sm:$0xff] }
   0xa   :  { %480 = vmatprep.subr.bf16.mxu0 %v550_v0  ;;  %507 = vmatpush3.bf16.msra.mxu1 %v543_v26 }
   0xb   :  { %508 = vmatprep.subr.bf16.mxu1 %v550_v0 }
   0xc   :  { %477 = vmatmul.mubr.msk.bf16.vlgmr.msra.gmra.mxu0 %vm49_vm3, %v25_v8 }
   0xd   :  { %481 = vmatpush3.bf16.msra.mxu0 %v534_v9  ;;  %488 = vmatprep.mubr.msk.bf16.mxu0 %vm552_vm2, %v550_v0 }
   0xe   :  { %482 = vmatprep.subr.bf16.mxu0 %v550_v0  ;;  %509 = vmatpush3.bf16.msra.mxu1 %v544_v27 }
   0xf   :  { %510 = vmatprep.subr.bf16.mxu1 %v550_v0 }
  0x11   :  { %483 = vmatpush3.bf16.msra.mxu0 %v535_v10 }
  0x12   :  { %484 = vmatprep.subr.bf16.mxu0 %v550_v0  ;;  %511 = vmatpush3.bf16.msra.mxu1 %v545_v28 }
  0x13   :  { %512 = vmatprep.subr.bf16.mxu1 %v550_v0 }
  0x15   :  { %485 = vmatpush3.bf16.msra.mxu0 %v536_v11 }
  0x16   :  { %486 = vmatprep.subr.bf16.mxu0 %v550_v0  ;;  %513 = vmatpush3.bf16.msra.mxu1 %v546_v29 }
  0x17   :  { %514 = vmatprep.subr.bf16.mxu1 %v550_v0 }
  0x19   :  { %487 = vmatpush3.bf16.msra.mxu0 %v537_v12 }
  0x1a   :  { %492 = vmatprep.subr.bf16.mxu0 %v550_v0  ;;  %515 = vmatpush3.bf16.msra.mxu1 %v547_v30 }
  0x1b   :  { %516 = vmatprep.subr.bf16.mxu1 %v550_v0 }
  0x1e   :  { %517 = vmatpush3.bf16.msra.mxu1 %v548_v39 }
  0x1f   :  { %518 = vmatprep.subr.bf16.mxu1 %v550_v0 }
  0x22   :  { %519 = vmatpush3.bf16.msra.mxu1 %v549_v40 }
  0xcc   :  { %v94_v14 = vpop.f32.mrf.mxu0 }
  0xcd   :  { %v95_v15 = vadd.f32 %v425_v13, %v94_v14 }
  0xce   :  { %v478_v16 = vpop.f32.mrf.mxu0 }
  0xcf   :  { %v100_v17 = vmax.f32 %v95_v15, 0.0 }
  0xd0   :  { %v97_v18 = vpop.f32.mrf.mxu0 }
  0xd1   :  { %v101_v20 = vpack.c.bf16 %v100_v17, %v100_v17 }
  0xd2   :  { %v479_v21 = vpop.f32.mrf.mxu0 }
  0xd3   :  { %489 = vmatmul.mubr.msk.bf16.vlgmr.msra.gmra.mxu0 %vm138_vm4, %v101_v20 }
  0xd4   :  { %493 = vmatpush3.bf16.msra.mxu0 %v538_v19  ;;  %500 = vmatprep.mubr.msk.bf16.mxu0 %vm552_vm2, %v550_v0 }
  0xd5   :  { %494 = vmatprep.subr.bf16.mxu0 %v550_v0 }
  0xd8   :  { %495 = vmatpush3.bf16.msra.mxu0 %v539_v22 }
  0xd9   :  { %496 = vmatprep.subr.bf16.mxu0 %v550_v0 }
  0xdc   :  { %497 = vmatpush3.bf16.msra.mxu0 %v540_v23 }
  0xdd   :  { %498 = vmatprep.subr.bf16.mxu0 %v550_v0 }
  0xe0   :  { %499 = vmatpush3.bf16.msra.mxu0 %v541_v24 }
 0x193   :  { %v176_v32 = vpop.f32.mrf.mxu0 }
 0x194   :  { %v177_v33 = vadd.f32 %v429_v31, %v176_v32 }
 0x195   :  { %v490_v34 = vpop.f32.mrf.mxu0 }
 0x196   :  { %v182_v35 = vmax.f32 %v177_v33, 0.0 }
 0x197   :  { %v179_v36 = vpop.f32.mrf.mxu0 }
 0x198   :  { %v183_v37 = vpack.c.bf16 %v182_v35, %v182_v35 }
 0x199   :  { %v491_v38 = vpop.f32.mrf.mxu0 }
 0x19a   :  { %501 = vmatmul.mubr.msk.bf16.vlgmr.msra.gmra.mxu0 %vm138_vm4, %v183_v37 }
 0x25a   :  { %v257_v42 = vpop.f32.mrf.mxu0 }
 0x25b   :  { %v258_v43 = vadd.f32 %v435_v41, %v257_v42 }
 0x25c   :  { %v502_v44 = vpop.f32.mrf.mxu0 }
 0x25d   :  { %v263_v45 = vmax.f32 %v258_v43, 0.0 }
 0x25e   :  { %v260_v46 = vpop.f32.mrf.mxu0 }
 0x25f   :  { %v264_v47 = vpack.c.bf16 %v263_v45, %v263_v45 }
 0x260   :  { %v503_v48 = vpop.f32.mrf.mxu0 }
 0x261   :  { %521 = vmatmul.mubr.bf16.vlgmr.msra.gmra.mxu1 %v264_v47 }
 0x321   :  { %v367_v50 = vpop.f32.mrf.mxu1 }
 0x322   :  { %v368_v51 = vadd.f32 %v441_v49, %v367_v50 }
 0x323   :  { %v522_v52 = vpop.f32.mrf.mxu1 }
 0x324   :  { %404 = vrot.lane.b32.xlu1 %v368_v51, %s553_s4  ;;  %v376_v53 = vsel %vm375_vm5, %v368_v51, -inf }
 0x325   :  { %377 = vmax.xlane.f32.xlu0 %v376_v53  ;;  %v370_v54 = vpop.f32.mrf.mxu1 }
 0x327   :  { %v523_v55 = vpop.f32.mrf.mxu1 }
 0x33b   :  { %380 = vrot.lane.b32.xlu0 %v374_v57, %s555_s2 }
 0x396   :  { %v405_v59 = vpop.permute.xlu1 %404 }
 0x397   :  { %v408_v60 = vsel %vm407_vm6, %v405_v59, 0.0 }
 0x398   :  { %409 = vadd.xlane.f32.xlu0 %v408_v60 }
 0x3ae   :  { %v378_v61 = vpop.xlane.xlu0 %377 }
 0x3af   :  { %vm379_vm7 = vcmp.eq.f32.partialorder %v368_v51, %v378_v61 }
 0x3b2   :  { %v381_v62 = vpop.permute.xlu0 %380 }
 0x3b3   :  { %v382_v63 = vsel %vm379_vm7, %v381_v62, 5 }
 0x3b4   :  { %v383_v0 = vsel %vm375_vm5, %v382_v63, 2147483647 }
 0x3b5   :  { %v385_v1 = vshra.s32 %v383_v0, 16  ;;  %v384_v3 = vand.u32 65535, %v383_v0 }
 0x3b7   :  { %v387_v2 = vcvt.s32.f32 %v385_v1  ;;  %v386_v5 = vcvt.s32.f32 %v384_v3 }
 0x3b9   :  { %388 = vmin.xlane.f32.xlu1 %v387_v2 }
 0x3ca   :  { %400 = vperm.xlu1 %530, %v368_v51  }
 0x421   :  { %v410_v6 = vpop.xlane.xlu0 %409 }
 0x422   :  { %v411_v9 = vmul.f32 0.2, %v410_v6 }
 0x442   :  { %v389_v4 = vpop.xlane.xlu1 %388 }
 0x443   :  { %vm390_vm8 = vcmp.eq.f32.partialorder %v387_v2, %v389_v4  ;;  %v395_v12 = vcvt.f32.s32 %v389_v4 }
 0x444   :  { %v391_v7 = vsel %vm390_vm8, %v386_v5, inf }
 0x445   :  { %392 = vmin.xlane.f32.xlu0 %v391_v7  ;;  %v396_v14 = vshll.u32 %v395_v12, 16 }
 0x446   :  { %v401_v8 = vpop.permute.xlu1 %400 }
 0x447   :  { %v403_v10 = vadd.f32 %v401_v8, %v368_v51 }
 0x449   :  { %v412_v11 = vsub.f32 %v403_v10, %v411_v9 }
 0x44b   :  { %415 = vrot.lane.b32.xlu1 %v412_v11, %s553_s4 }
 0x4bd   :  { %v416_v18 = vpop.permute.xlu1 %415 }
 0x4ce   :  { %v393_v13 = vpop.xlane.xlu0 %392 }
 0x4cf   :  { %v394_v15 = vcvt.f32.s32 %v393_v13 }
 0x4d1   :  { %v397_v16 = vadd.s32 %v396_v14, %v394_v15 }
 0x4d3   :  { %v413_v17 = vcvt.s32.f32 %v397_v16 }
 0x4d5   :  { %v418_v19 = vsel %vm407_vm6, %v416_v18, %v413_v17 }
 0x4d6   :  { %420 = vst.msk [vmem:[%s703_s6] sm:$0xff] %vm419_vm9, %v418_v19 }

</bundles_post_ra>
